<compile_context>
chip_gen: v7x
topology: tpu7x:2x2x1
jax: 0.10.0
libtpu: 0.0.40
codegen_flags: <defaults>
</compile_context>

<pallas_src>
import functools

import jax
import jax.numpy as jnp
from jax.experimental import pallas as pl
from jax.experimental.pallas import tpu as pltpu

EPS = 1e-5
_VMEM_LIMIT = 32 * 1024 * 1024


def _choose_l_tile(rows, length, bytes_per_elem=4):
    """Largest lane tile (full length, or a multiple of 512) with one block <= ~4 MiB."""
    block_budget = 4 * 1024 * 1024
    if rows * length * bytes_per_elem <= block_budget:
        return length
    lanes = (block_budget // (rows * bytes_per_elem)) // 512 * 512
    lanes = max(512, lanes)
    return min(lanes, length)


def _stats_kernel(x_ref, sum_ref, sq_ref, *, l_total, l_tile):
    """Accumulate per-row sum and sum-of-squares over the lane (H*W) axis."""
    i = pl.program_id(0)

    @pl.when(i == 0)
    def _():
        sum_ref[...] = jnp.zeros_like(sum_ref)
        sq_ref[...] = jnp.zeros_like(sq_ref)

    x = x_ref[...].astype(jnp.float32)
    if l_total % l_tile != 0:  # static: mask the ragged final tile
        lane = jax.lax.broadcasted_iota(jnp.int32, x.shape, dimension=1)
        x = jnp.where(i * l_tile + lane < l_total, x, 0.0)

    sum_ref[...] += jnp.sum(x, axis=-1, keepdims=True)
    sq_ref[...] += jnp.sum(x * x, axis=-1, keepdims=True)


def _normalize_kernel(x_ref, scale_ref, shift_ref, o_ref):
    """Streaming per-row affine: y = x * scale + shift."""
    x = x_ref[...].astype(jnp.float32)
    o_ref[...] = (x * scale_ref[...] + shift_ref[...]).astype(o_ref.dtype)


def batchnorm2d(x_nchw, gamma, beta, *, eps=EPS, l_tile=None):
    """x_nchw: (N, C, H, W).  gamma/beta: (C,)."""
    N, C, H, W = x_nchw.shape
    R = N * C
    L = H * W

    # Free, contiguous view of NCHW -- no HBM transpose on either side.
    x_rl = x_nchw.reshape(R, L)

    if l_tile is None:
        l_tile = _choose_l_tile(R, L)
    n_tiles = pl.cdiv(L, l_tile)

    # ---- Pass 1: per-row (= per (n, c) slice) sum and sum-of-squares ----
    row_sum, row_sq = pl.pallas_call(
        functools.partial(_stats_kernel, l_total=L, l_tile=l_tile),
        out_shape=(jax.ShapeDtypeStruct((R, 1), jnp.float32),
                   jax.ShapeDtypeStruct((R, 1), jnp.float32)),
        grid_spec=pltpu.PrefetchScalarGridSpec(
            num_scalar_prefetch=0,
            grid=(n_tiles,),
            in_specs=[pl.BlockSpec((R, l_tile), lambda i: (0, i))],
            out_specs=(pl.BlockSpec((R, 1), lambda i: (0, 0)),
                       pl.BlockSpec((R, 1), lambda i: (0, 0))),
        ),
        compiler_params=pltpu.CompilerParams(
            dimension_semantics=("arbitrary",),
            vmem_limit_bytes=_VMEM_LIMIT),
    )(x_rl)

    # ---- Tiny O(C) fold: one scale/shift per channel (negligible HBM/compute) ----
    count = jnp.float32(N * H * W)
    ch_sum = row_sum.reshape(N, C).sum(axis=0)
    ch_sq = row_sq.reshape(N, C).sum(axis=0)
    mean = ch_sum / count
    var = jnp.maximum(ch_sq / count - mean * mean, 0.0)  # biased (training) variance
    inv_std = jax.lax.rsqrt(var + eps)
    scale = gamma.astype(jnp.float32) * inv_std
    shift = beta.astype(jnp.float32) - mean * scale
    scale_r = jnp.broadcast_to(scale, (N, C)).reshape(R, 1)
    shift_r = jnp.broadcast_to(shift, (N, C)).reshape(R, 1)

    # ---- Pass 2: streaming normalize, lane-dense tiles, parallel grid ----
    out_rl = pl.pallas_call(
        _normalize_kernel,
        out_shape=jax.ShapeDtypeStruct((R, L), x_nchw.dtype),
        grid_spec=pltpu.PrefetchScalarGridSpec(
            num_scalar_prefetch=0,
            grid=(n_tiles,),
            in_specs=[pl.BlockSpec((R, l_tile), lambda i: (0, i)),
                      pl.BlockSpec((R, 1), lambda i: (0, 0)),
                      pl.BlockSpec((R, 1), lambda i: (0, 0))],
            out_specs=pl.BlockSpec((R, l_tile), lambda i: (0, i)),
        ),
        compiler_params=pltpu.CompilerParams(
            dimension_semantics=("parallel",),
            vmem_limit_bytes=_VMEM_LIMIT),
    )(x_rl, scale_r, shift_r)

    return out_rl.reshape(N, C, H, W)


def _reference_bn(x, gamma, beta, eps=EPS):
    mean = jnp.mean(x, axis=(0, 2, 3), keepdims=True)
    var = jnp.mean((x - mean) ** 2, axis=(0, 2, 3), keepdims=True)
    C = x.shape[1]
    return ((x - mean) / jnp.sqrt(var + eps) * gamma.reshape(1, C, 1, 1)
            + beta.reshape(1, C, 1, 1))


if __name__ == "__main__":
    key = jax.random.PRNGKey(0)

    # Primary check: small shape consistent with the module.
    N, C, H, W = 2, 4, 16, 16
    x = jax.random.normal(key, (N, C, H, W), dtype=jnp.float32)
    gamma = jnp.ones((C,), dtype=jnp.float32)   # default BatchNorm2d weight
    beta = jnp.zeros((C,), dtype=jnp.float32)   # default BatchNorm2d bias

    y = batchnorm2d(x, gamma, beta)
    jax.block_until_ready(y)
    assert jnp.max(jnp.abs(y - _reference_bn(x, gamma, beta))) < 1e-4, \
        "mismatch vs reference (single-tile path)"

    # Secondary check: exercises the multi-tile grid + ragged-tile masking path.
    N2, H2, W2 = 2, 48, 48                      # L = 2304, tiled at 512 lanes
    x2 = jax.random.normal(jax.random.PRNGKey(1), (N2, C, H2, W2), jnp.float32)
    y2 = batchnorm2d(x2, gamma, beta, l_tile=512)
    jax.block_until_ready(y2)
    assert jnp.max(jnp.abs(y2 - _reference_bn(x2, gamma, beta))) < 1e-4, \
        "mismatch vs reference (tiled path)"

    print("KERNEL_OK")
</pallas_src>

<mosaic_0001>
module attributes {stable_mosaic.version = 11 : i64} {
  func.func @_stats_kernel(%arg0: i32, %arg1: memref<8x256xf32, #tpu.memory_space<vmem>>, %arg2: memref<8x1xf32, #tpu.memory_space<vmem>>, %arg3: memref<8x1xf32, #tpu.memory_space<vmem>>) attributes {dimension_semantics = [#tpu.dimension_semantics<arbitrary>], iteration_bounds = array<i64: 1>, scalar_prefetch = 0 : i64, scratch_operands = 0 : i64, tpu.core_type = #tpu.core_type<tc>, window_params = [{transform_indices = @transform_0, window_bounds = array<i64: 8, 256>}, {pipeline_mode = #tpu.pipeline_mode<synchronous>, transform_indices = @transform_1, window_bounds = array<i64: 8, 1>}, {pipeline_mode = #tpu.pipeline_mode<synchronous>, transform_indices = @transform_2, window_bounds = array<i64: 8, 1>}]} {
    %c0_i32 = arith.constant 0 : i32
    %0 = arith.cmpi eq, %arg0, %c0_i32 : i32
    %1 = arith.extui %0 : i1 to i32
    %c0_i32_0 = arith.constant 0 : i32
    %2 = arith.cmpi ne, %1, %c0_i32_0 : i32
    scf.if %2 {
      %cst_11 = arith.constant 0.000000e+00 : f32
      %15 = vector.broadcast %cst_11 : f32 to vector<8x1xf32>
      %c0_12 = arith.constant 0 : index
      %c0_13 = arith.constant 0 : index
      %16 = vector.load %arg2[%c0_12, %c0_13] : memref<8x1xf32, #tpu.memory_space<vmem>>, vector<8x1xf32>
      tpu.vector_store %arg2[%c0_12, %c0_13], %15 {strides = array<i32>} : memref<8x1xf32, #tpu.memory_space<vmem>>, vector<8x1xf32>,
      %cst_14 = arith.constant 0.000000e+00 : f32
      %17 = vector.broadcast %cst_14 : f32 to vector<8x1xf32>
      %c0_15 = arith.constant 0 : index
      %c0_16 = arith.constant 0 : index
      %18 = vector.load %arg3[%c0_15, %c0_16] : memref<8x1xf32, #tpu.memory_space<vmem>>, vector<8x1xf32>
      tpu.vector_store %arg3[%c0_15, %c0_16], %17 {strides = array<i32>} : memref<8x1xf32, #tpu.memory_space<vmem>>, vector<8x1xf32>,
    } else {
    }
    %c0 = arith.constant 0 : index
    %c0_1 = arith.constant 0 : index
    %3 = vector.load %arg1[%c0, %c0_1] : memref<8x256xf32, #tpu.memory_space<vmem>>, vector<8x256xf32>
    %c0_2 = arith.constant 0 : index
    %c0_3 = arith.constant 0 : index
    %4 = vector.load %arg2[%c0_2, %c0_3] : memref<8x1xf32, #tpu.memory_space<vmem>>, vector<8x1xf32>
    %cst = arith.constant dense<0.000000e+00> : vector<8xf32>
    %5 = vector.multi_reduction <add>, %3, %cst [1] : vector<8x256xf32> to vector<8xf32>
    %6 = vector.shape_cast %5 : vector<8xf32> to vector<8x1xf32>
    %7 = arith.addf %4, %6 : vector<8x1xf32>
    %c0_4 = arith.constant 0 : index
    %c0_5 = arith.constant 0 : index
    %8 = vector.load %arg2[%c0_4, %c0_5] : memref<8x1xf32, #tpu.memory_space<vmem>>, vector<8x1xf32>
    tpu.vector_store %arg2[%c0_4, %c0_5], %7 {strides = array<i32>} : memref<8x1xf32, #tpu.memory_space<vmem>>, vector<8x1xf32>,
    %c0_6 = arith.constant 0 : index
    %c0_7 = arith.constant 0 : index
    %9 = vector.load %arg3[%c0_6, %c0_7] : memref<8x1xf32, #tpu.memory_space<vmem>>, vector<8x1xf32>
    %10 = arith.mulf %3, %3 : vector<8x256xf32>
    %cst_8 = arith.constant dense<0.000000e+00> : vector<8xf32>
    %11 = vector.multi_reduction <add>, %10, %cst_8 [1] : vector<8x256xf32> to vector<8xf32>
    %12 = vector.shape_cast %11 : vector<8xf32> to vector<8x1xf32>
    %13 = arith.addf %9, %12 : vector<8x1xf32>
    %c0_9 = arith.constant 0 : index
    %c0_10 = arith.constant 0 : index
    %14 = vector.load %arg3[%c0_9, %c0_10] : memref<8x1xf32, #tpu.memory_space<vmem>>, vector<8x1xf32>
    tpu.vector_store %arg3[%c0_9, %c0_10], %13 {strides = array<i32>} : memref<8x1xf32, #tpu.memory_space<vmem>>, vector<8x1xf32>,
    return
  }
  func.func @transform_0(%arg0: i32) -> (i32, i32) {
    %c0_i32 = arith.constant 0 : i32
    %c0_i32_0 = arith.constant 0 : i32
    return %c0_i32, %arg0 : i32, i32
  }
  func.func @transform_1(%arg0: i32) -> (i32, i32) {
    %c0_i32 = arith.constant 0 : i32
    %c0_i32_0 = arith.constant 0 : i32
    %c0_i32_1 = arith.constant 0 : i32
    return %c0_i32, %c0_i32_0 : i32, i32
  }
  func.func @transform_2(%arg0: i32) -> (i32, i32) {
    %c0_i32 = arith.constant 0 : i32
    %c0_i32_0 = arith.constant 0 : i32
    %c0_i32_1 = arith.constant 0 : i32
    return %c0_i32, %c0_i32_0 : i32, i32
  }
}

</mosaic_0001>

<bundles_post_ra>
// kernel: tpu_custom_call.1
= control target key start
LH: loop header
LB: loop body
LE: loop exit
PB: predicated region body
PF: predicated region fallthrough
CT: control target
= control target key end

     0   :  { %8 = vsyncpa [#allocation3], 0  ;;  %s81_s9 = smov [#allocation2]   ;;  %s132_s0 = inlined_call_operand.hbm [shape: f32[8,256], index: 0, kind: input, shape index: {}]   ;;  %s133_s1 = inlined_call_operand.vmem [shape: f32[8,1], index: 1, kind: output, shape index: {0}]   ;;  %s134_s2 = inlined_call_operand.vmem [shape: f32[8,1], index: 2, kind: output, shape index: {1}]  }
   0x1   :  { %s15_s10 = sshll.u32 %s81_s9, 4  ;;  %s57_s13 = scalar_lea.hbm %s132_s0, 256  ;;  %s16_s10 = int_to_ptr.vmem [resolvable:$true] %s15_s10 }
   0x2   :  { %p58_p0 = scmp.ne.s32.totalorder %s132_s0, %s57_s13  ;;  %p61_p1 = scmp.lt.u32.totalorder %s57_s13, %s132_s0 }
   0x4   :  { %p63_p2 = pnand %p61_p1, %p58_p0 }
   0x6   :  { %66 = shalt.err (!%p63_p2)
}
   0x7   :  { %s67_s18 = scalar_lea.vmem %s16_s10, 256  ;;  %p72_p4 = scmp.lt.s32.totalorder %s16_s10, %s16_s10 }
   0x8   :  { %p68_p3 = scmp.ne.s32.totalorder %s16_s10, %s67_s18  ;;  %p73_p5 = scmp.lt.s32.totalorder %s67_s18, %s67_s18 }
   0xa   :  { %p74_p6 = por %p73_p5, %p72_p4 }
   0xc   :  { %p75_p7 = pnand %p74_p6, %p68_p3 }
   0xe   :  { %78 = shalt.err (!%p75_p7)
}
   0xf   :  { %18 = dma.hbm_to_vmem [thread:$0]  %s132_s0, 256, %s16_s10, [#allocation3]  }
  0x10   :  { %79 = dma.done.wait [#allocation3], 256  }
  0x11   :  { %80 = vsyncadd [#allocation3], 4294967040  ;;  %vm26_vm0 = vcmask 7168   ;;  %v82_v0 = vmov 0.0   ;;  %v29_v1 = vld [vmem:[#allocation2] sm:$0xff]  ;;  %v30_v2 = vld [vmem:[#allocation2 + $0x8] sm:$0xff] }
  0x12   :  { %27 = vst.msk [vmem:[%s133_s1] sm:$0xff] %vm26_vm0, %v82_v0  ;;  %28 = vst.msk [vmem:[%s134_s2] sm:$0xff] %vm26_vm0, %v82_v0  ;;  %v32_v3 = vadd.f32 %v30_v2, %v29_v1  ;;  %v39_v4 = vmul.f32 %v29_v1, %v29_v1  ;;  %v40_v5 = vmul.f32 %v30_v2, %v30_v2 }
  0x14   :  { %33 = vadd.xlane.f32.xlu0 %v32_v3  ;;  %v41_v6 = vadd.f32 %v40_v5, %v39_v4 }
  0x18   :  { %42 = vadd.xlane.f32.xlu0 %v41_v6 }
  0x19   :  { %v31_v7 = vld [vmem:[%s133_s1] sm:$0xff] }
  0x1a   :  { %v38_v10 = vld [vmem:[%s134_s2] sm:$0xff] }
  0xa1   :  { %v34_v8 = vpop.xlane.xlu0 %33 }
  0xa2   :  { %v35_v9 = vadd.f32 %v34_v8, %v31_v7 }
  0xa4   :  { %37 = vst.msk [vmem:[%s133_s1] sm:$0xff] %vm26_vm0, %v35_v9 }
  0xa5   :  { %v43_v11 = vpop.xlane.xlu0 %42 }
  0xa6   :  { %v44_v12 = vadd.f32 %v43_v11, %v38_v10 }
  0xa8   :  { %45 = vst.msk [vmem:[%s134_s2] sm:$0xff] %vm26_vm0, %v44_v12 }
  0xa9   :  { %54 = vsyncpa [#allocation3], 1 }

</bundles_post_ra>
